<compile_context>
chip_gen: v7x
topology: tpu7x:2x2x1
jax: 0.10.0
libtpu: 0.0.40
codegen_flags: <defaults>
</compile_context>

<pallas_src>
import functools

import jax
import jax.numpy as jnp
from jax import lax
from jax.experimental import pallas as pl
from jax.experimental.pallas import tpu as pltpu


def _conv_bn_relu_kernel(x_ref, w_ref, scale_ref, shift_ref, o_ref, *, KH, H, Bb):
    """One batch block (Bb images) per grid step.

    x_ref:     (Bb, H + KH - 1, W*Cin)  bf16, H already zero-padded in the wrapper
    w_ref:     (KH, W*Cin, W*Cout)      bf16 banded conv weights (one block per row tap)
    scale_ref: (1, W*Cout)              f32 folded BN scale, tiled over W
    shift_ref: (1, W*Cout)              f32 folded BN shift, tiled over W
    o_ref:     (Bb, H, W*Cout)          lane-dense output slab
    """
    WCin = x_ref.shape[-1]
    WCout = o_ref.shape[-1]

    x = x_ref[...]                                       # (Bb, H+KH-1, W*Cin) bf16

    # KH accumulating MXU dots (f32 accumulator); taps are static slices of the
    # padded tile — no zero materialization, no lane-axis concatenation.
    acc = jnp.zeros((Bb * H, WCout), dtype=jnp.float32)
    for kh in range(KH):                                 # unrolled (KH is tiny/static)
        taps = x[:, kh:kh + H, :].reshape(Bb * H, WCin)  # (Bb*H, W*Cin)
        acc = acc + jnp.dot(taps, w_ref[kh],
                            preferred_element_type=jnp.float32)

    # Eval-mode BN (f32 scale + shift) + ReLU epilogue.
    y = jnp.maximum(acc * scale_ref[...] + shift_ref[...], 0.0)
    o_ref[...] = y.reshape(Bb, H, WCout).astype(o_ref.dtype)


def conv_block_forward(x_nchw, weight, gamma, beta, running_mean, running_var,
                       eps=1e-5, compute_dtype=jnp.bfloat16, target_mxu_rows=256):
    """PyTorch-equivalent forward of convBlock (eval-mode BN).

    x_nchw: (B, Cin, H, W) float32
    weight: (Cout, Cin, KH, KW) float32 (PyTorch OIHW layout)
    returns (B, Cout, H, W) float32
    """
    B, Cin, H, W = x_nchw.shape
    Cout, Cin_w, KH, KW = weight.shape
    assert Cin_w == Cin
    pad = (KH - 1) // 2
    assert KH == KW and KH % 2 == 1 and 2 * pad == KH - 1, (
        "kernel implements 'same' convs (odd kernel_size, padding=(k-1)//2)")

    # Batch block size: fatten M = Bb*H toward the MXU row count (128 v5e / 256 v6e+).
    Bb = max(1, min(B, target_mxu_rows // max(H, 1)))
    B_pad = pl.cdiv(B, Bb) * Bb

    # ---- wrapper glue (plain JAX; XLA fuses transpose + cast + pad into one copy) ----
    # NCHW -> (B_pad, H + 2*pad, W, Cin) bf16 with batch pad + H zero pad.
    x_hwc = jnp.transpose(x_nchw, (0, 2, 3, 1)).astype(compute_dtype)
    x_hwc = jnp.pad(x_hwc, ((0, B_pad - B), (pad, pad), (0, 0), (0, 0)))
    x_flat = x_hwc.reshape(B_pad, H + 2 * pad, W * Cin)

    # Eval-mode BN fold: per-channel scale/shift kept in f32 for the epilogue
    # (keeps precision even when running_var is tiny).
    scale = gamma / jnp.sqrt(running_var + eps)                   # (Cout,)
    shift = beta - running_mean * scale                           # (Cout,)
    scale_t = jnp.tile(scale, W).reshape(1, W * Cout).astype(jnp.float32)
    shift_t = jnp.tile(shift, W).reshape(1, W * Cout).astype(jnp.float32)

    # Banded per-row-tap weights:
    #   w_big[kh, win*Cin + ci, w*Cout + co] = weight_hwio[kh, kw, ci, co]
    # with win = w + kw - pad; out-of-range win dropped (encodes W zero padding).
    w_hwio = jnp.transpose(weight, (2, 3, 1, 0))                  # (KH, KW, Cin, Cout)
    kh_blocks = []
    for kh in range(KH):
        blk = jnp.zeros((W * Cin, W * Cout), dtype=jnp.float32)
        for kw in range(KW):
            sel = jnp.eye(W, W, k=pad - kw, dtype=jnp.float32)    # [win,w]=1 iff win==w+kw-pad
            blk = blk + jnp.kron(sel, w_hwio[kh, kw])
        kh_blocks.append(blk)
    w_big = jnp.stack(kh_blocks, axis=0).astype(compute_dtype)    # (KH, W*Cin, W*Cout)

    kernel = functools.partial(_conv_bn_relu_kernel, KH=KH, H=H, Bb=Bb)

    flops = 2 * B_pad * H * (KH * W * Cin) * (W * Cout)
    bytes_accessed = (x_flat.size * x_flat.dtype.itemsize
                      + w_big.size * w_big.dtype.itemsize
                      + (scale_t.size + shift_t.size) * 4
                      + B_pad * H * W * Cout * x_nchw.dtype.itemsize)

    out2d = pl.pallas_call(
        kernel,
        out_shape=jax.ShapeDtypeStruct((B_pad, H, W * Cout), x_nchw.dtype),
        grid_spec=pltpu.PrefetchScalarGridSpec(
            num_scalar_prefetch=0,
            grid=(B_pad // Bb,),
            in_specs=[
                pl.BlockSpec((Bb, H + 2 * pad, W * Cin), lambda b: (b, 0, 0)),
                pl.BlockSpec((KH, W * Cin, W * Cout), lambda b: (0, 0, 0)),
                pl.BlockSpec((1, W * Cout), lambda b: (0, 0)),
                pl.BlockSpec((1, W * Cout), lambda b: (0, 0)),
            ],
            out_specs=pl.BlockSpec((Bb, H, W * Cout), lambda b: (b, 0, 0)),
        ),
        compiler_params=pltpu.CompilerParams(
            dimension_semantics=("parallel",),          # batch blocks split across TCs
            vmem_limit_bytes=32 * 1024 * 1024,          # tiny working set; explicit cap
        ),
        cost_estimate=pl.CostEstimate(
            flops=flops, transcendentals=0, bytes_accessed=bytes_accessed),
    )(x_flat, w_big, scale_t, shift_t)

    out2d = out2d[:B]
    # (B, H, W*Cout) -> NCHW to preserve the module's interface (this transpose is a
    # real HBM shuffle — see TODO above about keeping the lane-dense layout fused).
    return jnp.transpose(out2d.reshape(B, H, W, Cout), (0, 3, 1, 2))


def _reference_forward(x_nchw, weight, gamma, beta, running_mean, running_var,
                       eps=1e-5):
    """Pure-JAX f32 reference (lax.conv) for correctness checking."""
    y = lax.conv_general_dilated(
        x_nchw, weight, window_strides=(1, 1), padding=((1, 1), (1, 1)),
        dimension_numbers=("NCHW", "OIHW", "NCHW"))
    scale = gamma / jnp.sqrt(running_var + eps)
    shift = beta - running_mean * scale
    y = y * scale[None, :, None, None] + shift[None, :, None, None]
    return jnp.maximum(y, 0.0)


if __name__ == "__main__":
    # Small shapes consistent with convBlock(inplace=4, outplace=8).
    B, Cin, H, W = 2, 4, 16, 16
    Cout, KH, KW = 8, 3, 3

    key = jax.random.PRNGKey(0)
    kx, kw, kg, kb, km, kv = jax.random.split(key, 6)

    x = jax.random.normal(kx, (B, Cin, H, W), dtype=jnp.float32)
    # Deterministic synthetic parameters (not a checkpoint load).
    weight = jax.random.normal(kw, (Cout, Cin, KH, KW), dtype=jnp.float32) * 0.1
    gamma = 1.0 + 0.1 * jax.random.normal(kg, (Cout,), dtype=jnp.float32)
    beta = 0.1 * jax.random.normal(kb, (Cout,), dtype=jnp.float32)
    running_mean = 0.1 * jax.random.normal(km, (Cout,), dtype=jnp.float32)
    running_var = jnp.abs(1.0 + 0.1 * jax.random.normal(kv, (Cout,),
                                                        dtype=jnp.float32))

    out = conv_block_forward(x, weight, gamma, beta, running_mean, running_var)
    out = jax.block_until_ready(out)

    ref = _reference_forward(x, weight, gamma, beta, running_mean, running_var)
    assert out.shape == (B, Cout, H, W)
    # bf16 matmul operands (f32 accumulation, f32 BN epilogue) vs f32 reference.
    assert jnp.allclose(out, ref, atol=5e-2, rtol=5e-2), "mismatch vs reference"

    print("KERNEL_OK")
</pallas_src>

<mosaic_0001>
module attributes {stable_mosaic.version = 11 : i64} {
  func.func @_conv_bn_relu_kernel(%arg0: i32, %arg1: memref<2x18x64xbf16, #tpu.memory_space<vmem>>, %arg2: memref<3x64x128xbf16, #tpu.memory_space<vmem>>, %arg3: memref<1x128xf32, #tpu.memory_space<vmem>>, %arg4: memref<1x128xf32, #tpu.memory_space<vmem>>, %arg5: memref<2x16x128xf32, #tpu.memory_space<vmem>>) attributes {dimension_semantics = [#tpu.dimension_semantics<parallel>], iteration_bounds = array<i64: 1>, scalar_prefetch = 0 : i64, scratch_operands = 0 : i64, tpu.core_type = #tpu.core_type<tc>, window_params = [{transform_indices = @transform_0, window_bounds = array<i64: 2, 18, 64>}, {pipeline_mode = #tpu.pipeline_mode<synchronous>, transform_indices = @transform_1, window_bounds = array<i64: 3, 64, 128>}, {pipeline_mode = #tpu.pipeline_mode<synchronous>, transform_indices = @transform_2, window_bounds = array<i64: 1, 128>}, {pipeline_mode = #tpu.pipeline_mode<synchronous>, transform_indices = @transform_3, window_bounds = array<i64: 1, 128>}, {transform_indices = @transform_4, window_bounds = array<i64: 2, 16, 128>}]} {
    %c0 = arith.constant 0 : index
    %c0_0 = arith.constant 0 : index
    %c0_1 = arith.constant 0 : index
    %0 = vector.load %arg1[%c0, %c0_0, %c0_1] : memref<2x18x64xbf16, #tpu.memory_space<vmem>>, vector<2x18x64xbf16>
    %cst = arith.constant 0.000000e+00 : f32
    %1 = vector.broadcast %cst : f32 to vector<32x128xf32>
    %2 = vector.extract_strided_slice %0 {offsets = [0, 0, 0], sizes = [2, 16, 64], strides = [1, 1, 1]} : vector<2x18x64xbf16> to vector<2x16x64xbf16>
    %3 = vector.shape_cast %2 : vector<2x16x64xbf16> to vector<32x64xbf16>
    %c0_2 = arith.constant 0 : index
    %c0_3 = arith.constant 0 : index
    %c0_4 = arith.constant 0 : index
    %4 = vector.load %arg2[%c0_2, %c0_3, %c0_4] : memref<3x64x128xbf16, #tpu.memory_space<vmem>>, vector<1x64x128xbf16>
    %5 = vector.shape_cast %4 : vector<1x64x128xbf16> to vector<64x128xbf16>
    %cst_5 = arith.constant dense<0.000000e+00> : vector<32x128xf32>
    %6 = tpu.matmul %3, %5, %cst_5 {dimension_numbers = #tpu.dot_dimension_numbers<[1], [0], [0], [1], [0, 0, 1, 1], [], []>} : vector<32x64xbf16>, vector<64x128xbf16>, vector<32x128xf32> -> vector<32x128xf32>
    %7 = arith.addf %1, %6 : vector<32x128xf32>
    %8 = vector.extract_strided_slice %0 {offsets = [0, 1, 0], sizes = [2, 16, 64], strides = [1, 1, 1]} : vector<2x18x64xbf16> to vector<2x16x64xbf16>
    %9 = vector.shape_cast %8 : vector<2x16x64xbf16> to vector<32x64xbf16>
    %c1 = arith.constant 1 : index
    %c0_6 = arith.constant 0 : index
    %c0_7 = arith.constant 0 : index
    %10 = vector.load %arg2[%c1, %c0_6, %c0_7] : memref<3x64x128xbf16, #tpu.memory_space<vmem>>, vector<1x64x128xbf16>
    %11 = vector.shape_cast %10 : vector<1x64x128xbf16> to vector<64x128xbf16>
    %cst_8 = arith.constant dense<0.000000e+00> : vector<32x128xf32>
    %12 = tpu.matmul %9, %11, %cst_8 {dimension_numbers = #tpu.dot_dimension_numbers<[1], [0], [0], [1], [0, 0, 1, 1], [], []>} : vector<32x64xbf16>, vector<64x128xbf16>, vector<32x128xf32> -> vector<32x128xf32>
    %13 = arith.addf %7, %12 : vector<32x128xf32>
    %14 = vector.extract_strided_slice %0 {offsets = [0, 2, 0], sizes = [2, 16, 64], strides = [1, 1, 1]} : vector<2x18x64xbf16> to vector<2x16x64xbf16>
    %15 = vector.shape_cast %14 : vector<2x16x64xbf16> to vector<32x64xbf16>
    %c2 = arith.constant 2 : index
    %c0_9 = arith.constant 0 : index
    %c0_10 = arith.constant 0 : index
    %16 = vector.load %arg2[%c2, %c0_9, %c0_10] : memref<3x64x128xbf16, #tpu.memory_space<vmem>>, vector<1x64x128xbf16>
    %17 = vector.shape_cast %16 : vector<1x64x128xbf16> to vector<64x128xbf16>
    %cst_11 = arith.constant dense<0.000000e+00> : vector<32x128xf32>
    %18 = tpu.matmul %15, %17, %cst_11 {dimension_numbers = #tpu.dot_dimension_numbers<[1], [0], [0], [1], [0, 0, 1, 1], [], []>} : vector<32x64xbf16>, vector<64x128xbf16>, vector<32x128xf32> -> vector<32x128xf32>
    %19 = arith.addf %13, %18 : vector<32x128xf32>
    %c0_12 = arith.constant 0 : index
    %c0_13 = arith.constant 0 : index
    %20 = vector.load %arg3[%c0_12, %c0_13] : memref<1x128xf32, #tpu.memory_space<vmem>>, vector<1x128xf32>
    %21 = vector.broadcast %20 : vector<1x128xf32> to vector<32x128xf32>
    %22 = arith.mulf %19, %21 : vector<32x128xf32>
    %c0_14 = arith.constant 0 : index
    %c0_15 = arith.constant 0 : index
    %23 = vector.load %arg4[%c0_14, %c0_15] : memref<1x128xf32, #tpu.memory_space<vmem>>, vector<1x128xf32>
    %24 = vector.broadcast %23 : vector<1x128xf32> to vector<32x128xf32>
    %25 = arith.addf %22, %24 : vector<32x128xf32>
    %cst_16 = arith.constant 0.000000e+00 : f32
    %26 = vector.broadcast %cst_16 : f32 to vector<32x128xf32>
    %27 = arith.maximumf %25, %26 : vector<32x128xf32>
    %28 = vector.shape_cast %27 : vector<32x128xf32> to vector<2x16x128xf32>
    %c0_17 = arith.constant 0 : index
    %c0_18 = arith.constant 0 : index
    %c0_19 = arith.constant 0 : index
    %29 = vector.load %arg5[%c0_17, %c0_18, %c0_19] : memref<2x16x128xf32, #tpu.memory_space<vmem>>, vector<2x16x128xf32>
    tpu.vector_store %arg5[%c0_17, %c0_18, %c0_19], %28 {strides = array<i32>} : memref<2x16x128xf32, #tpu.memory_space<vmem>>, vector<2x16x128xf32>,
    return
  }
  func.func @transform_0(%arg0: i32) -> (i32, i32, i32) {
    %c0_i32 = arith.constant 0 : i32
    %c0_i32_0 = arith.constant 0 : i32
    %c0_i32_1 = arith.constant 0 : i32
    return %arg0, %c0_i32, %c0_i32_0 : i32, i32, i32
  }
  func.func @transform_1(%arg0: i32) -> (i32, i32, i32) {
    %c0_i32 = arith.constant 0 : i32
    %c0_i32_0 = arith.constant 0 : i32
    %c0_i32_1 = arith.constant 0 : i32
    %c0_i32_2 = arith.constant 0 : i32
    return %c0_i32, %c0_i32_0, %c0_i32_1 : i32, i32, i32
  }
  func.func @transform_2(%arg0: i32) -> (i32, i32) {
    %c0_i32 = arith.constant 0 : i32
    %c0_i32_0 = arith.constant 0 : i32
    %c0_i32_1 = arith.constant 0 : i32
    return %c0_i32, %c0_i32_0 : i32, i32
  }
  func.func @transform_3(%arg0: i32) -> (i32, i32) {
    %c0_i32 = arith.constant 0 : i32
    %c0_i32_0 = arith.constant 0 : i32
    %c0_i32_1 = arith.constant 0 : i32
    return %c0_i32, %c0_i32_0 : i32, i32
  }
  func.func @transform_4(%arg0: i32) -> (i32, i32, i32) {
    %c0_i32 = arith.constant 0 : i32
    %c0_i32_0 = arith.constant 0 : i32
    %c0_i32_1 = arith.constant 0 : i32
    return %arg0, %c0_i32, %c0_i32_0 : i32, i32, i32
  }
}

</mosaic_0001>

<bundles_post_ra>
// kernel: tpu_custom_call.1
= control target key start
LH: loop header
LB: loop body
LE: loop exit
PB: predicated region body
PF: predicated region fallthrough
CT: control target
= control target key end

     0   :  { %9 = vsyncpa [#allocation3], 0  ;;  %s729_s0 = inlined_call_operand.vmem [shape: bf16[2,18,64], index: 0, kind: input, shape index: {}]   ;;  %s730_s1 = inlined_call_operand.hbm [shape: bf16[3,64,128], index: 1, kind: input, shape index: {}]   ;;  %s731_s2 = inlined_call_operand.vmem [shape: f32[1,128], index: 2, kind: input, shape index: {}]   ;;  %s732_s3 = inlined_call_operand.vmem [shape: f32[1,128], index: 3, kind: input, shape index: {}]   ;;  %s733_s4 = inlined_call_operand.hbm [shape: f32[2,16,128], index: 4, kind: output, shape index: {}]  }
   0x1   :  { %10 = vsyncpa [#allocation4], 0  ;;  %s604_s15 = smov [#allocation2]   ;;  %s556_s19 = scalar_lea.hbm %s730_s1, 1536 }
   0x2   :  { %s18_s16 = sshll.u32 %s604_s15, 4  ;;  %p557_p0 = scmp.ne.s32.totalorder %s730_s1, %s556_s19  ;;  %s19_s16 = int_to_ptr.vmem [resolvable:$true] %s18_s16 }
   0x3   :  { %p560_p1 = scmp.lt.u32.totalorder %s556_s19, %s730_s1 }
   0x5   :  { %p562_p2 = pnand %p560_p1, %p557_p0 }
   0x7   :  { %565 = shalt.err (!%p562_p2)
}
   0x8   :  { %s566_s24 = scalar_lea.vmem %s19_s16, 1536  ;;  %p571_p4 = scmp.lt.s32.totalorder %s19_s16, %s19_s16 }
   0x9   :  { %p567_p3 = scmp.ne.s32.totalorder %s19_s16, %s566_s24  ;;  %p572_p5 = scmp.lt.s32.totalorder %s566_s24, %s566_s24 }
   0xb   :  { %p573_p6 = por %p572_p5, %p571_p4 }
   0xd   :  { %p574_p7 = pnand %p573_p6, %p567_p3 }
   0xf   :  { %577 = shalt.err (!%p574_p7)
}
  0x10   :  { %s605_s25 = smov 64   ;;  %s606_s26 = smov 4  }
  0x11   :  { %24 = dma.hbm_to_vmem [thread:$0]  %s730_s1, 1536, %s19_s16, [#allocation3], %s605_s25, %s605_s25, %s606_s26  }
  0x12   :  { %600 = dma.done.wait [#allocation3], 1536  }
  0x13   :  { %601 = vsyncadd [#allocation3], 4294965760  ;;  %v542_v0 = vld [vmem:[#allocation2] sm:$0xff]   ;;  %v543_v1 = vld [vmem:[#allocation2 + $0x8] sm:$0xff]   ;;  %vm137_vm0 = vcmask 523264   ;;  %vm284_vm3 = vcmask 1042432  }
  0x14   :  { %504 = vmatprep.subr.bf16.mxu0 %v542_v0  ;;  %v544_v2 = vld [vmem:[#allocation2 + $0x10] sm:$0xff]   ;;  %v546_v3 = vld [vmem:[#allocation2 + $0x20] sm:$0xff]   ;;  %v33_v4 = vld [vmem:[%s729_s0] sm:$0xf]  ;;  %vm47_vm1 = vsmask.f32 3328 }
  0x15   :  { %505 = vmatpush3.bf16.msra.mxu0 %v542_v0  ;;  %v34_v5 = vld [vmem:[%s729_s0 + $0x4] sm:$0xf]  ;;  %492 = vmatprep.subr.bf16.mxu1 %v546_v3  ;;  %v51_v6 = vshrl.u32 %v33_v4, 16  ;;  %vm48_vm2 = vsmask.f32 7440  ;;  %vm285_vm4 = vcmask 1046532  }
  0x16   :  { %506 = vmatprep.subr.bf16.mxu0 %v543_v1  ;;  %v454_v7 = vcombine.low %v33_v4, %v34_v5  ;;  %493 = vmatpush3.bf16.msra.mxu1 %v546_v3  ;;  %v289_v8 = vrot.slane %v34_v5, 5  ;;  %v545_v9 = vld [vmem:[#allocation2 + $0x18] sm:$0xff]   ;;  %v54_v10 = vshll.u32 %v33_v4, 16  ;;  %v64_v11 = vshrl.u32 %v34_v5, 16  ;;  %v549_v12 = vld [vmem:[#allocation2 + $0x28] sm:$0xff]   ;;  %v548_v18 = vld [vmem:[#allocation2 + $0x40] sm:$0xff]  }
  0x17   :  { %v657_v13 = vld [vmem:[%s729_s0 + $0xc] sm:$0xf]  ;;  %v462_v14 = vrot.slane %v33_v4, 9  ;;  %v662_v15 = vld [vmem:[%s729_s0 + $0x10] sm:$0xf]  ;;  %v53_v16 = vrot.slane %v51_v6, 4  ;;  %494 = vmatprep.subr.bf16.mxu1 %v549_v12  ;;  %vm669_vm5 = vmor %vm284_vm3, %vm285_vm4 }
  0x18   :  { %512 = vmatprep.mubr.msk.bf16.mxu0 %vm137_vm0, %v454_v7  ;;  %v291_v17 = vrot.slane %v289_v8, 4  ;;  %v75_v19 = vshrl.u32 %v657_v13, 16  ;;  %v78_v20 = vshll.u32 %v657_v13, 16  ;;  %v552_v21 = vld [vmem:[#allocation2 + $0x30] sm:$0xff]   ;;  %v88_v22 = vshrl.u32 %v662_v15, 16  ;;  %v554_v26 = vld [vmem:[#allocation2 + $0x38] sm:$0xff]   ;;  %vm683_vm6 = vmor %vm47_vm1, %vm48_vm2 }
  0x19   :  { %507 = vmatpush3.bf16.msra.mxu0 %v543_v1  ;;  %v56_v23 = vrot.slane %v54_v10, 5  ;;  %v455_v25 = vcombine.low %v657_v13, %v662_v15  ;;  %v35_v27 = vld [vmem:[%s729_s0 + $0x8] sm:$0x1]  ;;  %v60_v28 = vshll.u32 %v34_v5, 16  ;;  %v66_v30 = vrot.slane %v64_v11, 4  ;;  %v551_v36 = vld [vmem:[#allocation2 + $0x48] sm:$0xff]  }
  0x1a   :  { %508 = vmatprep.subr.bf16.mxu0 %v544_v2  ;;  %495 = vmatpush3.bf16.msra.mxu1 %v549_v12  ;;  %v70_v31 = vshll.u32 %v35_v27, 16  ;;  %v292_v32 = vrot.slane %v35_v27, 5  ;;  %v38_v34 = vld [vmem:[%s729_s0 + $0x14] sm:$0x1]  ;;  %v77_v35 = vrot.slane %v75_v19, 4  ;;  %v80_v39 = vrot.slane %v78_v20, 5 }
  0x1b   :  { %496 = vmatprep.subr.bf16.mxu1 %v552_v21  ;;  %v57_v29 = vor.u32 %v56_v23, %v53_v16  ;;  %v62_v33 = vrot.slane %v60_v28, 5  ;;  %v84_v40 = vshll.u32 %v662_v15, 16  ;;  %v290_v41 = vsel %vm669_vm5, %v462_v14, %v289_v8  ;;  %v553_v53 = vld [vmem:[#allocation2 + $0x50] sm:$0xff]   ;;  %v555_v0 = vld [vmem:[#allocation2 + $0x58] sm:$0xff]   ;;  %v472_v11 = vld [vmem:[%s731_s2] ss:$0 sm:$0xff] }
  0x1c   :  { %v72_v43 = vrot.slane %v70_v31, 5  ;;  %v90_v44 = vrot.slane %v88_v22, 4  ;;  %v94_v45 = vshll.u32 %v38_v34, 16  ;;  %v81_v46 = vor.u32 %v80_v39, %v77_v35  ;;  %v473_v14 = vld [vmem:[%s732_s3] ss:$0 sm:$0xff]  ;;  %s607_s17 = smov [#allocation5]  }
  0x1d   :  { %509 = vmatpush3.bf16.msra.mxu0 %v544_v2  ;;  %v58_v38 = vrot.slane %v57_v29, 4  ;;  %v67_v42 = vor.u32 %v66_v30, %v62_v33  ;;  %v86_v47 = vrot.slane %v84_v40, 5  ;;  %v293_v48 = vsel %vm669_vm5, %v291_v17, %v292_v32  ;;  %s434_s18 = sshll.u32 %s607_s17, 4  ;;  %s435_s18 = int_to_ptr.vmem [resolvable:$true] %s434_s18 }
  0x1e   :  { %510 = vmatprep.subr.bf16.mxu0 %v545_v9  ;;  %497 = vmatpush3.bf16.msra.mxu1 %v552_v21  ;;  %v296_v49 = vrot.slane %v662_v15, 5  ;;  %v464_v52 = vcombine.low %v290_v41, %v293_v48  ;;  %v82_v54 = vrot.slane %v81_v46, 4  ;;  %v96_v56 = vrot.slane %v94_v45, 5  ;;  %s578_s2 = scalar_lea.vmem %s435_s18, 512  ;;  %p583_p9 = scmp.lt.s32.totalorder %s435_s18, %s435_s18 }
  0x1f   :  { %498 = vmatprep.subr.bf16.mxu1 %v554_v26  ;;  %v63_v50 = vsel %vm683_vm6, %v58_v38, %v62_v33  ;;  %v68_v51 = vrot.slane %v67_v42, 4  ;;  %v91_v55 = vor.u32 %v90_v44, %v86_v47  ;;  %v463_v61 = vrot.slane %v657_v13, 9  ;;  %p579_p8 = scmp.ne.s32.totalorder %s435_s18, %s578_s2  ;;  %p584_p10 = scmp.lt.s32.totalorder %s578_s2, %s578_s2 }
  0x20   :  { %v87_v59 = vsel %vm683_vm6, %v82_v54, %v86_v47  ;;  %v299_v62 = vrot.slane %v38_v34, 5  ;;  %v298_v63 = vrot.slane %v296_v49, 4 }
  0x21   :  { %511 = vmatpush3.bf16.msra.mxu0 %v545_v9  ;;  %v73_v57 = vsel %vm683_vm6, %v68_v51, %v72_v43  ;;  %v92_v60 = vrot.slane %v91_v55, 4  ;;  %v297_v3 = vsel %vm669_vm5, %v463_v61, %v296_v49  ;;  %p585_p11 = por %p584_p10, %p583_p9 }
  0x22   :  { %516 = vmatprep.subr.bf16.mxu0 %v548_v18  ;;  %499 = vmatpush3.bf16.msra.mxu1 %v554_v26  ;;  %v446_v58 = vcombine.low %v63_v50, %v73_v57  ;;  %v300_v4 = vsel %vm669_vm5, %v298_v63, %v299_v62 }
  0x23   :  { %v97_v1 = vsel %vm683_vm6, %v92_v60, %v96_v56  ;;  %v465_v5 = vcombine.low %v297_v3, %v300_v4  ;;  %p586_p12 = pnand %p585_p11, %p579_p8 }
  0x24   :  { %513 = vmatmul.mubr.msk.bf16.vlgmr.msra.gmra.mrb[0].mxu0 %vm137_vm0, %v455_v25  ;;  %500 = vmatprep.mubr.msk.bf16.mxu1 %vm137_vm0, %v446_v58  ;;  %v447_v2 = vcombine.low %v87_v59, %v97_v1 }
  0x25   :  { %517 = vmatpush3.bf16.msra.mxu0 %v548_v18  ;;  %524 = vmatprep.mubr.msk.bf16.mxu0 %vm137_vm0, %v464_v52 }
  0x26   :  { %518 = vmatprep.subr.bf16.mxu0 %v551_v36  ;;  %501 = vmatmul.mubr.msk.bf16.vlgmr.msra.gmra.mrb[0].mxu1 %vm137_vm0, %v447_v2 }
  0x29   :  { %519 = vmatpush3.bf16.msra.mxu0 %v551_v36 }
  0x2a   :  { %520 = vmatprep.subr.bf16.mxu0 %v553_v53 }
  0x2d   :  { %521 = vmatpush3.bf16.msra.mxu0 %v553_v53 }
  0x2e   :  { %522 = vmatprep.subr.bf16.mxu0 %v555_v0 }
  0x31   :  { %523 = vmatpush3.bf16.msra.mxu0 %v555_v0 }
  0x34   :  { %525 = vmatmul.mubr.msk.bf16.vlgmr.msra.gmra.mrb[0].mxu0 %vm137_vm0, %v465_v5 }
  0xf9   :  { %v502_v6 = vpop.f32.mrb[0].mxu1 }
  0xfa   :  { %v178_v7 = vpop.f32.mrb[1].mxu1 }
  0xfb   :  { %v503_v8 = vpop.f32.mrb[2].mxu1 }
  0xfc   :  { %v181_v9 = vpop.f32.mrb[3].mxu1 }
 0x107   :  { %v526_v10 = vpop.f32.mrb[0].mxu0 }
 0x108   :  { %v528_v12 = vadd.f32 %v526_v10, %v502_v6  ;;  %v380_v13 = vpop.f32.mrb[1].mxu0 }
 0x109   :  { %v529_v15 = vadd.f32 %v380_v13, %v178_v7  ;;  %v527_v16 = vpop.f32.mrb[2].mxu0 }
 0x10a   :  { %v408_v17 = vmul.f32 %v528_v12, %v472_v11  ;;  %v530_v18 = vadd.f32 %v527_v16, %v503_v8  ;;  %v383_v19 = vpop.f32.mrb[3].mxu0 }
 0x10b   :  { %v406_v20 = vmul.f32 %v529_v15, %v472_v11  ;;  %v531_v21 = vadd.f32 %v383_v19, %v181_v9 }
 0x10c   :  { %v419_v22 = vadd.f32 %v473_v14, %v408_v17  ;;  %v409_v23 = vmul.f32 %v530_v18, %v472_v11 }
 0x10d   :  { %v417_v24 = vadd.f32 %v473_v14, %v406_v20  ;;  %v407_v25 = vmul.f32 %v531_v21, %v472_v11 }
 0x10e   :  { %v423_v26 = vmax.f32 %v419_v22, 0.0  ;;  %v420_v27 = vadd.f32 %v473_v14, %v409_v23 }
 0x10f   :  { %v421_v28 = vmax.f32 %v417_v24, 0.0  ;;  %v418_v29 = vadd.f32 %v473_v14, %v407_v25 }
 0x110   :  { %427 = vst [vmem:[#allocation5 + $0x10] sm:$0xff] %v423_v26  ;;  %v424_v30 = vmax.f32 %v420_v27, 0.0 }
 0x111   :  { %425 = vst [vmem:[#allocation5] sm:$0xff] %v421_v28  ;;  %v422_v31 = vmax.f32 %v418_v29, 0.0 }
 0x112   :  { %428 = vst [vmem:[#allocation5 + $0x18] sm:$0xff] %v424_v30 }
 0x113   :  { %426 = vst [vmem:[#allocation5 + $0x8] sm:$0xff] %v422_v31 }
 0x114   :  { %589 = shalt.err (!%p586_p12)
}
 0x115   :  { %s590_s20 = scalar_lea.hbm %s733_s4, 512 }
 0x116   :  { %p591_p13 = scmp.ne.s32.totalorder %s733_s4, %s590_s20  ;;  %p594_p0 = scmp.lt.u32.totalorder %s590_s20, %s733_s4 }
 0x118   :  { %p596_p1 = pnand %p594_p0, %p591_p13 }
 0x11a   :  { %599 = shalt.err (!%p596_p1)
}
 0x11b   :  { %s608_s25 = smov 128   ;;  %s609_s26 = smov 8  }
 0x11c   :  { %440 = dma.vmem_to_hbm [thread:$0]  %s435_s18, 512, %s733_s4, [#allocation4], %s608_s25, %s608_s25, %s609_s26  }
 0x11d   :  { %602 = dma.done.wait [#allocation4], 512  }
 0x11e   :  { %603 = vsyncadd [#allocation4], 4294966784 }
 0x11f   :  { %444 = vsyncpa [#allocation3], 1 }
 0x120   :  { %445 = vsyncpa [#allocation4], 1 }

</bundles_post_ra>
